<compile_context>
chip_gen: v7x
topology: tpu7x:2x2x1
jax: 0.10.0
libtpu: 0.0.40
codegen_flags: <defaults>
</compile_context>

<pallas_src>
import functools

import jax
import jax.numpy as jnp
from jax.experimental import pallas as pl
from jax.experimental.pallas import tpu as pltpu


def _round_up(x, m):
    return ((x + m - 1) // m) * m


# ----------------------------------------------------------------------------
# Kernel 1: Linear(dim, 1) projection -> lane-dense scores row (1, N)
# ----------------------------------------------------------------------------
def _proj_kernel(h_ref, w_ref, b_ref, o_ref):
    h = h_ref[...]          # (TM, D) f32 node tile in VMEM
    w = w_ref[...]          # (1, D)  f32, resident every grid step
    b = b_ref[0]            # bias scalar read from SMEM
    # Contract over D with the node tile as the (transposed) RHS: the MXU emits
    # the scores directly as a lane-dense (1, TM) row -> unmasked stores.
    s = jax.lax.dot_general(w, h, (((1,), (1,)), ((), ())),
                            preferred_element_type=jnp.float32)
    o_ref[...] = (s + b).astype(o_ref.dtype)


def _choose_tm(n, d):
    """Rows per tile: ~2-4 MiB per (tm, d) f32 tile (amortizes the ~0.35us
    per-grid-step overhead), multiple of 128 (lane-dense out block), and >= 2
    grid steps for moderate N so v7x's two TensorCores both get work.
    2 x 4 MiB double-buffered tiles stay under the v5e 16 MiB scoped default."""
    row_bytes = 4 * d
    target, cap = 2 << 20, 4 << 20
    tm = max(128, (target // row_bytes) // 128 * 128)
    tm = min(tm, max(128, (cap // row_bytes) // 128 * 128))
    if n > 256:
        tm = min(tm, max(128, _round_up(pl.cdiv(n, 2), 128)))
    return tm


def proj_scores(h, w, b, *, tm=None):
    """scores = (h @ w.T + b) as a flat (N,) vector.  h: [N, D], w: [1, D], b: [1]."""
    N, D = h.shape
    h = h.astype(jnp.float32)
    w = jnp.asarray(w, jnp.float32).reshape(1, D)
    b = jnp.asarray(b, jnp.float32).reshape(1)

    if tm is None:
        tm = _choose_tm(N, D)
    if tm >= N:
        tm = N                                   # single full-array block
    else:
        tm = max(128, (tm // 128) * 128)         # lane-dense out block needs %128
        if tm >= N:
            tm = N

    grid = (pl.cdiv(N, tm),)                     # ragged last block, no wrapper pad
    out = pl.pallas_call(
        _proj_kernel,
        out_shape=jax.ShapeDtypeStruct((1, N), jnp.float32),
        grid=grid,
        in_specs=[
            pl.BlockSpec((tm, D), lambda i: (i, 0)),
            pl.BlockSpec((1, D), lambda i: (0, 0)),
            pl.BlockSpec(memory_space=pltpu.SMEM),      # bias scalar in SMEM
        ],
        out_specs=pl.BlockSpec((1, tm), lambda i: (0, i)),   # lane-dense output
        compiler_params=pltpu.CompilerParams(
            dimension_semantics=("parallel",)),
        cost_estimate=pl.CostEstimate(
            flops=2 * N * D, transcendentals=0,
            bytes_accessed=4 * (N * D + D + N + 1)),
    )(h, w, b)
    return out[0]          # (N,) -- only real rows, padded lanes never written


# ----------------------------------------------------------------------------
# Kernel 2: BCEWithLogitsLoss(logits, [ones | zeros]) with mean reduction.
# Lane-dense: logits are fed as (2, B) so the batch lives on the lane axis;
# labels come from the sublane index (row 0 -> 1, row 1 -> 0), no label tensor.
# ----------------------------------------------------------------------------
def _bce_kernel(xt_ref, loss_ref, *, n_rows, tb):
    i = pl.program_id(0)

    @pl.when(i == 0)
    def _init():
        loss_ref[0, 0] = jnp.float32(0.0)

    x = xt_ref[...].astype(jnp.float32)       # (2, TB) logits
    row = jax.lax.broadcasted_iota(jnp.int32, x.shape, 0)
    y = (row == 0).astype(jnp.float32)        # sublane 0 -> target 1, sublane 1 -> 0
    # Numerically-stable BCE-with-logits (matches torch.nn.BCEWithLogitsLoss):
    #   l = max(x, 0) - x*y + log(1 + exp(-|x|))
    per = jnp.maximum(x, 0.0) - x * y + jnp.log1p(jnp.exp(-jnp.abs(x)))
    # Mask the ragged tail lanes of the last tile.
    col = jax.lax.broadcasted_iota(jnp.int32, x.shape, 1) + i * tb
    per = jnp.where(col < n_rows, per, 0.0)
    loss_ref[0, 0] = loss_ref[0, 0] + jnp.sum(per)

    @pl.when(i == pl.num_programs(0) - 1)
    def _finalize():
        loss_ref[0, 0] = loss_ref[0, 0] * (1.0 / (n_rows * 2))


def _bce_fixed_labels_ref(logits):
    x = logits.astype(jnp.float32)
    return 0.5 * (jnp.mean(jax.nn.softplus(-x[:, 0])) +
                  jnp.mean(jax.nn.softplus(x[:, 1])))


def bce_with_logits_fixed_labels(logits, *, tb=2048, min_pallas_rows=2048,
                                 force_pallas=False):
    """mean BCEWithLogits of logits [B, 2] against the fixed label [ones | zeros]."""
    B, C = logits.shape
    if C != 2:
        raise ValueError("fixed-label BCE expects logits of shape (B, 2)")
    if B < min_pallas_rows and not force_pallas:
        # Small-B fast path: a pallas_call launch + pipeline prologue dwarfs the
        # math at Pool's realistic cur_len; let XLA fuse it with the producer.
        return _bce_fixed_labels_ref(logits)

    xt = logits.T.astype(jnp.float32)          # (2, B): batch on the lane axis
    tb = max(128, (tb // 128) * 128)
    tb = min(tb, _round_up(B, 128))
    grid = (pl.cdiv(B, tb),)
    kernel = functools.partial(_bce_kernel, n_rows=B, tb=tb)
    loss = pl.pallas_call(
        kernel,
        out_shape=jax.ShapeDtypeStruct((1, 1), jnp.float32),
        grid=grid,
        in_specs=[pl.BlockSpec((2, tb), lambda i: (0, i))],
        out_specs=pl.BlockSpec(memory_space=pltpu.SMEM),    # scalar loss in SMEM
        compiler_params=pltpu.CompilerParams(
            dimension_semantics=("arbitrary",)),            # sequential accumulation
    )(xt)
    return loss[0, 0]


# ----------------------------------------------------------------------------
# Pool wrapper: deterministic parameter init + top-k gating glue
# ----------------------------------------------------------------------------
class PoolPallas:
    def __init__(self, k, dim, key):
        self.k = k
        self.dim = dim
        kw, kb = jax.random.split(key)
        bound = 1.0 / (float(dim) ** 0.5)       # PyTorch nn.Linear default init
        self.w = jax.random.uniform(kw, (1, dim), jnp.float32, -bound, bound)
        self.b = jax.random.uniform(kb, (1,), jnp.float32, -bound, bound)

    def proj(self, h):
        return proj_scores(h, self.w, self.b)            # Pallas kernel, (N,)

    def score_and_pool(self, h):
        """Top-k pool of node embeddings h [N, D] using the Linear(dim,1) scorer."""
        scores = self.proj(h)
        # Top-k selection is data-dependent gather -> plain JAX glue.
        vals, idx = jax.lax.top_k(scores, self.k)
        pooled = h[idx] * jax.nn.sigmoid(vals)[:, None]   # gated pooled embeddings
        return scores, pooled, idx

    # TODO(synk): the original Pool.forward builds per-batch models, Adam
    # optimizers, cosine LR schedulers and backprops the BCE loss; that training
    # orchestration has no Pallas equivalent and is not reproduced here.


if __name__ == "__main__":
    key = jax.random.PRNGKey(0)
    k_param, k_h, k_h2, k_l1, k_l2, k_l3 = jax.random.split(key, 6)

    D, K = 32, 4
    pool = PoolPallas(K, D, k_param)

    # --- projection / top-k pooling path (single full-array tile, N=16) ---
    h = jax.random.normal(k_h, (16, D), jnp.float32)
    scores, pooled, idx = pool.score_and_pool(h)
    scores_ref = jnp.sum(h * pool.w, axis=-1) + pool.b[0]
    # MXU f32 matmul is multi-pass; tolerance covers reduced-precision passes.
    assert scores.shape == (16,)
    assert jnp.allclose(scores, scores_ref, atol=2e-2, rtol=2e-2)

    # multi-tile + ragged-edge path (N=300, tm=128 -> grid 3, last tile 44 rows)
    h2 = jax.random.normal(k_h2, (300, D), jnp.float32)
    scores2 = proj_scores(h2, pool.w, pool.b, tm=128)
    scores2_ref = jnp.sum(h2 * pool.w, axis=-1) + pool.b[0]
    assert scores2.shape == (300,)
    assert jnp.allclose(scores2, scores2_ref, atol=2e-2, rtol=2e-2)

    # --- BCE-with-logits path (labels implicitly [ones | zeros]) ---
    cur_len = 8
    logits_small = jax.random.normal(k_l1, (cur_len, 2), jnp.float32)
    loss_small = bce_with_logits_fixed_labels(logits_small)     # plain-JAX fast path
    assert jnp.allclose(loss_small, _bce_fixed_labels_ref(logits_small),
                        atol=1e-5, rtol=1e-5)

    logits_big = jax.random.normal(k_l2, (4096, 2), jnp.float32)
    loss_big = bce_with_logits_fixed_labels(logits_big)         # lane-dense Pallas path
    assert jnp.allclose(loss_big, _bce_fixed_labels_ref(logits_big),
                        atol=1e-5, rtol=1e-5)

    # forced Pallas path with ragged last block (B=1000, tb=128 -> 8 grid steps)
    logits_rg = jax.random.normal(k_l3, (1000, 2), jnp.float32)
    loss_rg = bce_with_logits_fixed_labels(logits_rg, tb=128, force_pallas=True)
    assert jnp.allclose(loss_rg, _bce_fixed_labels_ref(logits_rg),
                        atol=1e-5, rtol=1e-5)

    jax.block_until_ready((scores, pooled, idx, scores2,
                           loss_small, loss_big, loss_rg))
    print("KERNEL_OK")
</pallas_src>

<mosaic_0001>
module attributes {stable_mosaic.version = 11 : i64} {
  func.func @_proj_kernel(%arg0: i32, %arg1: memref<16x32xf32, #tpu.memory_space<vmem>>, %arg2: memref<1x32xf32, #tpu.memory_space<vmem>>, %arg3: memref<1xf32, #tpu.memory_space<smem>>, %arg4: memref<1x16xf32, #tpu.memory_space<vmem>>) attributes {dimension_semantics = [#tpu.dimension_semantics<parallel>], iteration_bounds = array<i64: 1>, scalar_prefetch = 0 : i64, scratch_operands = 0 : i64, tpu.core_type = #tpu.core_type<tc>, window_params = [{transform_indices = @transform_0, window_bounds = array<i64: 16, 32>}, {pipeline_mode = #tpu.pipeline_mode<synchronous>, transform_indices = @transform_1, window_bounds = array<i64: 1, 32>}, {transform_indices = @transform_2, window_bounds = array<i64: 1>}, {transform_indices = @transform_3, window_bounds = array<i64: 1, 16>}]} {
    %c0 = arith.constant 0 : index
    %c0_0 = arith.constant 0 : index
    %0 = vector.load %arg1[%c0, %c0_0] : memref<16x32xf32, #tpu.memory_space<vmem>>, vector<16x32xf32>
    %c0_1 = arith.constant 0 : index
    %c0_2 = arith.constant 0 : index
    %1 = vector.load %arg2[%c0_1, %c0_2] : memref<1x32xf32, #tpu.memory_space<vmem>>, vector<1x32xf32>
    %c0_3 = arith.constant 0 : index
    %2 = memref.load %arg3[%c0_3] : memref<1xf32, #tpu.memory_space<smem>>
    %cst = arith.constant dense<0.000000e+00> : vector<1x16xf32>
    %3 = tpu.matmul %1, %0, %cst {dimension_numbers = #tpu.dot_dimension_numbers<[1], [1], [0], [0], [0, 0, 1, 0], [], []>} : vector<1x32xf32>, vector<16x32xf32>, vector<1x16xf32> -> vector<1x16xf32>
    %4 = vector.broadcast %2 : f32 to vector<1x16xf32>
    %5 = arith.addf %3, %4 : vector<1x16xf32>
    %c0_4 = arith.constant 0 : index
    %c0_5 = arith.constant 0 : index
    %6 = vector.load %arg4[%c0_4, %c0_5] : memref<1x16xf32, #tpu.memory_space<vmem>>, vector<1x16xf32>
    tpu.vector_store %arg4[%c0_4, %c0_5], %5 {strides = array<i32>} : memref<1x16xf32, #tpu.memory_space<vmem>>, vector<1x16xf32>,
    return
  }
  func.func @transform_0(%arg0: i32) -> (i32, i32) {
    %c0_i32 = arith.constant 0 : i32
    %c0_i32_0 = arith.constant 0 : i32
    return %arg0, %c0_i32 : i32, i32
  }
  func.func @transform_1(%arg0: i32) -> (i32, i32) {
    %c0_i32 = arith.constant 0 : i32
    %c0_i32_0 = arith.constant 0 : i32
    %c0_i32_1 = arith.constant 0 : i32
    return %c0_i32, %c0_i32_0 : i32, i32
  }
  func.func @transform_2(%arg0: i32) -> i32 {
    %c0_i32 = arith.constant 0 : i32
    %c0_i32_0 = arith.constant 0 : i32
    return %c0_i32 : i32
  }
  func.func @transform_3(%arg0: i32) -> (i32, i32) {
    %c0_i32 = arith.constant 0 : i32
    %c0_i32_0 = arith.constant 0 : i32
    return %c0_i32, %arg0 : i32, i32
  }
}

</mosaic_0001>

<bundles_post_ra>
// kernel: tpu_custom_call.1
= control target key start
LH: loop header
LB: loop body
LE: loop exit
PB: predicated region body
PF: predicated region fallthrough
CT: control target
= control target key end

     0   :  { %9 = vsyncpa [#allocation4], 0  ;;  %s261_s0 = inlined_call_operand.hbm [shape: f32[16,32], index: 0, kind: input, shape index: {}]   ;;  %s262_s1 = inlined_call_operand.vmem [shape: f32[1,32], index: 1, kind: input, shape index: {}]   ;;  %s263_s2 = inlined_call_operand.<no memory space> [shape: f32[1], index: 2, kind: input, shape index: {}]   ;;  %s264_s3 = inlined_call_operand.hbm [shape: f32[1,16], index: 3, kind: output, shape index: {}]  }
   0x1   :  { %10 = vsyncpa [#allocation5], 0  ;;  %s204_s12 = smov [#allocation3]   ;;  %s156_s16 = scalar_lea.hbm %s261_s0, 256 }
   0x2   :  { %s16_s13 = sshll.u32 %s204_s12, 4  ;;  %p157_p0 = scmp.ne.s32.totalorder %s261_s0, %s156_s16  ;;  %s17_s13 = int_to_ptr.vmem [resolvable:$true] %s16_s13 }
   0x3   :  { %p160_p1 = scmp.lt.u32.totalorder %s156_s16, %s261_s0 }
   0x5   :  { %p162_p2 = pnand %p160_p1, %p157_p0 }
   0x7   :  { %165 = shalt.err (!%p162_p2)
}
   0x8   :  { %s166_s21 = scalar_lea.vmem %s17_s13, 256  ;;  %p171_p4 = scmp.lt.s32.totalorder %s17_s13, %s17_s13 }
   0x9   :  { %p167_p3 = scmp.ne.s32.totalorder %s17_s13, %s166_s21  ;;  %p172_p5 = scmp.lt.s32.totalorder %s166_s21, %s166_s21 }
   0xb   :  { %p173_p6 = por %p172_p5, %p171_p4 }
   0xd   :  { %p174_p7 = pnand %p173_p6, %p167_p3 }
   0xf   :  { %177 = shalt.err (!%p174_p7)
}
  0x10   :  { %s205_s22 = smov 128   ;;  %s206_s23 = smov 8  }
  0x11   :  { %22 = dma.hbm_to_vmem [thread:$0]  %s261_s0, 256, %s17_s13, [#allocation4], %s205_s22, %s205_s22, %s206_s23  }
  0x12   :  { %200 = dma.done.wait [#allocation4], 256  }
  0x13   :  { %201 = vsyncadd [#allocation4], 4294967040  ;;  %v207_v0 = vmov 0.0|0.0   ;;  %vm208_vm0 = vmmov 0   ;;  %v209_v1 = vmov 0.0   ;;  %vm35_vm1 = vcmask 261120  }
  0x14   :  { %145 = vmatprep.subr.bf16.mxu0 %v207_v0  ;;  %142 = vmatprep.mubr.msk.f32.mxu0 %vm208_vm0, %v209_v1  ;;  %v30_v2 = vld [vmem:[#allocation3] sm:$0xff]  ;;  %v31_v3 = vld [vmem:[#allocation3 + $0x8] sm:$0xff]  ;;  %vm147_vm2 = vmpackc.low %vm35_vm1, %vm35_vm1  ;;  %v34_v6 = vstv %s263_s2  ;;  %s210_s29 = smov [#allocation6]   ;;  %vm115_vm3 = vcmask 122880  }
  0x15   :  { %v146_v4 = vpack.c.bf16 %v31_v3, %v30_v2  ;;  %v32_v5 = vld [vmem:[%s262_s1] sm:$0x1]  ;;  %s123_s30 = sshll.u32 %s210_s29, 4  ;;  %s124_s30 = int_to_ptr.vmem [resolvable:$true] %s123_s30 }
  0x16   :  { %s178_s4 = scalar_lea.vmem %s124_s30, 16  ;;  %s182_s5 = scalar_lea.vmem %s124_s30, 32 }
  0x17   :  { %148 = vmatpush3.bf16.xpose.msk.msra.mxu0 %vm147_vm2, %v146_v4  ;;  %p179_p8 = scmp.ne.s32.totalorder %s124_s30, %s178_s4  ;;  %p183_p9 = scmp.lt.s32.totalorder %s124_s30, %s124_s30 }
  0x18   :  { %p184_p10 = scmp.lt.s32.totalorder %s182_s5, %s178_s4 }
  0x1a   :  { %p185_p11 = por %p184_p10, %p183_p9 }
  0x1c   :  { %p186_p12 = pnand %p185_p11, %p179_p8 }
  0x1e   :  { %143 = vmatmul.mubr.msk.f32.vlgmr.msra.gmra.mrb[0].mxu0 %vm35_vm1, %v32_v5 }
  0xf1   :  { %v111_v7 = vpop.f32.mrb[0].mxu0 }
  0xf2   :  { %v112_v8 = vadd.f32 %v111_v7, %v34_v6  ;;  %v144_v9 = vpop.f32.mrb[1].mxu0 }
  0xf4   :  { %116 = vst.msk [vmem:[#allocation6] sm:$0x1] %vm115_vm3, %v112_v8 }
  0xf5   :  { %189 = shalt.err (!%p186_p12)
}
  0xf6   :  { %s190_s2 = scalar_lea.hbm %s264_s3, 16 }
  0xf7   :  { %p191_p13 = scmp.ne.s32.totalorder %s264_s3, %s190_s2  ;;  %p194_p0 = scmp.lt.u32.totalorder %s190_s2, %s264_s3 }
  0xf9   :  { %p196_p1 = pnand %p194_p0, %p191_p13 }
  0xfb   :  { %199 = shalt.err (!%p196_p1)
}
  0xfc   :  { %126 = dma.vmem_to_hbm [thread:$0]  %s124_s30, 16, %s264_s3, [#allocation5]  }
  0xfd   :  { %202 = dma.done.wait [#allocation5], 16  }
  0xfe   :  { %203 = vsyncadd [#allocation5], 4294967280 }
  0xff   :  { %130 = vsyncpa [#allocation4], 1 }
 0x100   :  { %131 = vsyncpa [#allocation5], 1 }

</bundles_post_ra>
